<compile_context>
chip_gen: v7x
topology: tpu7x:2x2x1
jax: 0.10.0
libtpu: 0.0.40
codegen_flags: <defaults>
</compile_context>

<pallas_src>
import jax
import jax.numpy as jnp
from jax.experimental import pallas as pl
from jax.experimental.pallas import tpu as pltpu


def _round_up(x, m):
    return ((x + m - 1) // m) * m


# ---------------------------------------------------------------------------
# Kernel A: all layers resident in VMEM (small configs).  One grid step per
# batch tile; the layer loop is fully unrolled inside the kernel so the LLO
# scheduler can overlap the two matmuls with the surrounding VPU work.
# ---------------------------------------------------------------------------
def _fused_kernel(x_ref, w1_ref, b1_ref, w2_ref, b2_ref, out_ref):
    num_layers = w1_ref.shape[0]
    x = x_ref[...]                                           # (TB, Hp) f32
    for l in range(num_layers):                              # static unroll
        h = jnp.dot(x.astype(w1_ref.dtype), w1_ref[l],
                    preferred_element_type=jnp.float32) + b1_ref[l]
        h = jnp.maximum(h, 0.0)                              # ReLU (f32, VPU)
        y = jnp.dot(h.astype(w2_ref.dtype), w2_ref[l],
                    preferred_element_type=jnp.float32) + b2_ref[l]
        x = x + y                                            # residual (f32)
    out_ref[...] = x


# ---------------------------------------------------------------------------
# Kernel B: one layer per grid step.  The output block index is constant
# along the (innermost) layer axis, so out_ref stays resident in VMEM and
# carries the activation across layers; the next layer's weights are
# prefetched by the BlockSpec pipeline while the current layer computes.
# ---------------------------------------------------------------------------
def _layered_kernel(x_ref, w1_ref, b1_ref, w2_ref, b2_ref, out_ref):
    layer = pl.program_id(1)

    @pl.when(layer == 0)
    def _():
        out_ref[...] = x_ref[...]

    x = out_ref[...]                                         # (TB, Hp) f32
    h = jnp.dot(x.astype(w1_ref.dtype), w1_ref[0],
                preferred_element_type=jnp.float32) + b1_ref[0]
    h = jnp.maximum(h, 0.0)
    y = jnp.dot(h.astype(w2_ref.dtype), w2_ref[0],
                preferred_element_type=jnp.float32) + b2_ref[0]
    out_ref[...] = x + y


def residual_network(x, w1, b1, w2, b2, *,
                     weights_dtype=jnp.bfloat16,
                     batch_tile=None,
                     fuse_weight_limit_bytes=12 << 20,
                     max_fused_layers=16):
    """x: (B, H) f32;  w1, w2: (L, H, H) ([in, out]);  b1, b2: (L, 1, H).
    Returns (B, H) f32."""
    num_layers, H, _ = w1.shape
    B = x.shape[0]

    # Lane-dense hidden dim (multiple of 128) and 8-aligned batch tile.
    Hp = _round_up(H, 128)
    if batch_tile is None:
        batch_tile = 256       # big tile amortizes per-step + weight streaming
    TB = _round_up(min(batch_tile, _round_up(B, 8)), 8)
    Bp = _round_up(B, TB)
    nb = Bp // TB

    # Zero padding is exact for this network: padded lanes stay zero through
    # every layer (padded batch rows are sliced away), so the slice back is
    # lossless.
    def pad3(a, r, c):
        return (jnp.zeros((a.shape[0], r, c), a.dtype)
                .at[:, :a.shape[1], :a.shape[2]].set(a))

    x_p = jnp.zeros((Bp, Hp), jnp.float32).at[:B, :H].set(x.astype(jnp.float32))
    w1_p = pad3(w1, Hp, Hp).astype(weights_dtype)
    w2_p = pad3(w2, Hp, Hp).astype(weights_dtype)
    b1_p = pad3(b1, 1, Hp).astype(jnp.float32)
    b2_p = pad3(b2, 1, Hp).astype(jnp.float32)

    w_itemsize = jnp.dtype(weights_dtype).itemsize
    total_weight_bytes = num_layers * 2 * Hp * Hp * w_itemsize
    fused = (total_weight_bytes <= fuse_weight_limit_bytes
             and num_layers <= max_fused_layers)

    if fused:
        grid = (nb,)
        in_specs = [
            pl.BlockSpec((TB, Hp), lambda b: (b, 0)),                   # x tile
            pl.BlockSpec((num_layers, Hp, Hp), lambda b: (0, 0, 0)),    # W1 (all)
            pl.BlockSpec((num_layers, 1, Hp), lambda b: (0, 0, 0)),     # b1 (all)
            pl.BlockSpec((num_layers, Hp, Hp), lambda b: (0, 0, 0)),    # W2 (all)
            pl.BlockSpec((num_layers, 1, Hp), lambda b: (0, 0, 0)),     # b2 (all)
        ]
        out_specs = pl.BlockSpec((TB, Hp), lambda b: (b, 0))
        dim_sem = ("parallel",)
        kernel = _fused_kernel
        weight_bufs = 2 * total_weight_bytes
        bias_bufs = 2 * 2 * num_layers * Hp * 4
    else:
        grid = (nb, num_layers)
        in_specs = [
            pl.BlockSpec((TB, Hp), lambda b, l: (b, 0)),                # x tile
            pl.BlockSpec((1, Hp, Hp), lambda b, l: (l, 0, 0)),          # W1[l]
            pl.BlockSpec((1, 1, Hp), lambda b, l: (l, 0, 0)),           # b1[l]
            pl.BlockSpec((1, Hp, Hp), lambda b, l: (l, 0, 0)),          # W2[l]
            pl.BlockSpec((1, 1, Hp), lambda b, l: (l, 0, 0)),           # b2[l]
        ]
        out_specs = pl.BlockSpec((TB, Hp), lambda b, l: (b, 0))
        # Batch axis is embarrassingly parallel; the layer axis carries the
        # resident output accumulator and MUST stay "arbitrary" (innermost).
        dim_sem = ("parallel", "arbitrary")
        kernel = _layered_kernel
        weight_bufs = 2 * 2 * Hp * Hp * w_itemsize   # one layer, double-buffered
        bias_bufs = 2 * 2 * Hp * 4

    act_bufs = 4 * TB * Hp * 4                       # x (2 bufs) + out (+ writeback)
    est = weight_bufs + bias_bufs + act_bufs
    vmem_limit = int(min(max(2 * est + (4 << 20), 16 << 20), 64 << 20))

    # Advisory cost hint for XLA scheduling around the custom call.
    flops = 2 * 2 * Bp * Hp * Hp * num_layers
    bytes_accessed = (total_weight_bytes * (1 if fused else nb)
                      + 2 * Bp * Hp * 4
                      + 2 * num_layers * Hp * 4)
    cost = pl.CostEstimate(flops=flops, transcendentals=0,
                           bytes_accessed=bytes_accessed)

    out = pl.pallas_call(
        kernel,
        out_shape=jax.ShapeDtypeStruct((Bp, Hp), jnp.float32),
        grid_spec=pltpu.PrefetchScalarGridSpec(
            num_scalar_prefetch=0,
            grid=grid,
            in_specs=in_specs,
            out_specs=out_specs,
        ),
        compiler_params=pltpu.CompilerParams(
            dimension_semantics=dim_sem,
            vmem_limit_bytes=vmem_limit,
        ),
        cost_estimate=cost,
        # x_p is a fresh padded temporary, so aliasing it to the output is a
        # free HBM-buffer saving with no caller-visible donation.
        input_output_aliases={0: 0},
    )(x_p, w1_p, b1_p, w2_p, b2_p)

    return out[:B, :H]


def init_params(key, num_layers, hidden_dim):
    """nn.Linear-style init (uniform +/- 1/sqrt(fan_in)).  Weights are stored
    transposed ([in, out]) so the kernel computes x @ W."""
    bound = 1.0 / float(hidden_dim) ** 0.5
    keys = jax.random.split(key, 4)
    w1 = jax.random.uniform(keys[0], (num_layers, hidden_dim, hidden_dim),
                            jnp.float32, -bound, bound)
    b1 = jax.random.uniform(keys[1], (num_layers, 1, hidden_dim),
                            jnp.float32, -bound, bound)
    w2 = jax.random.uniform(keys[2], (num_layers, hidden_dim, hidden_dim),
                            jnp.float32, -bound, bound)
    b2 = jax.random.uniform(keys[3], (num_layers, 1, hidden_dim),
                            jnp.float32, -bound, bound)
    return w1, b1, w2, b2


def reference(x, w1, b1, w2, b2, weights_dtype=jnp.bfloat16):
    """Pure-JAX reference matching the PyTorch forward, mirroring the kernel's
    bf16-operand / f32-accumulation matmul precision."""
    x = x.astype(jnp.float32)
    for l in range(w1.shape[0]):
        h = jnp.dot(x.astype(weights_dtype), w1[l].astype(weights_dtype),
                    preferred_element_type=jnp.float32) + b1[l]
        h = jnp.maximum(h, 0.0)
        y = jnp.dot(h.astype(weights_dtype), w2[l].astype(weights_dtype),
                    preferred_element_type=jnp.float32) + b2[l]
        x = x + y
    return x


if __name__ == "__main__":
    root = jax.random.PRNGKey(0)

    def run_case(case_id, num_layers, hidden_dim, batch, **kwargs):
        k_x, k_p = jax.random.split(jax.random.fold_in(root, case_id))
        x = jax.random.normal(k_x, (batch, hidden_dim), jnp.float32)
        w1, b1, w2, b2 = init_params(k_p, num_layers, hidden_dim)
        out = jax.block_until_ready(
            residual_network(x, w1, b1, w2, b2, **kwargs))
        ref = reference(x, w1, b1, w2, b2)
        assert out.shape == (batch, hidden_dim)
        err = float(jnp.max(jnp.abs(out - ref)))
        assert jnp.allclose(out, ref, atol=1e-2, rtol=1e-2), (
            f"case {case_id}: mismatch vs reference (max abs err {err})")

    # Lane-aligned config -> fused single-grid-step path.
    run_case(0, num_layers=3, hidden_dim=128, batch=16)
    # Tiny module-sized config -> exercises H=32 -> 128 / batch padding path.
    run_case(1, num_layers=3, hidden_dim=32, batch=8)
    # Force the per-layer streaming path (resident output accumulator).
    run_case(2, num_layers=3, hidden_dim=128, batch=16,
             fuse_weight_limit_bytes=0)
    # Multi-batch-tile grid (batch padding + "parallel" batch axis), both paths.
    run_case(3, num_layers=4, hidden_dim=128, batch=48, batch_tile=16)
    run_case(4, num_layers=4, hidden_dim=128, batch=48, batch_tile=16,
             fuse_weight_limit_bytes=0)

    print("KERNEL_OK")
</pallas_src>

<mosaic_0001>
module attributes {stable_mosaic.version = 11 : i64} {
  func.func @_fused_kernel(%arg0: i32, %arg1: memref<16x128xf32, #tpu.memory_space<vmem>>, %arg2: memref<3x128x128xbf16, #tpu.memory_space<vmem>>, %arg3: memref<3x1x128xf32, #tpu.memory_space<vmem>>, %arg4: memref<3x128x128xbf16, #tpu.memory_space<vmem>>, %arg5: memref<3x1x128xf32, #tpu.memory_space<vmem>>, %arg6: memref<16x128xf32, #tpu.memory_space<vmem>>) attributes {dimension_semantics = [#tpu.dimension_semantics<parallel>], iteration_bounds = array<i64: 1>, scalar_prefetch = 0 : i64, scratch_operands = 0 : i64, tpu.core_type = #tpu.core_type<tc>, window_params = [{transform_indices = @transform_0, window_bounds = array<i64: 16, 128>}, {pipeline_mode = #tpu.pipeline_mode<synchronous>, transform_indices = @transform_1, window_bounds = array<i64: 3, 128, 128>}, {pipeline_mode = #tpu.pipeline_mode<synchronous>, transform_indices = @transform_2, window_bounds = array<i64: 3, 1, 128>}, {pipeline_mode = #tpu.pipeline_mode<synchronous>, transform_indices = @transform_3, window_bounds = array<i64: 3, 128, 128>}, {pipeline_mode = #tpu.pipeline_mode<synchronous>, transform_indices = @transform_4, window_bounds = array<i64: 3, 1, 128>}, {transform_indices = @transform_5, window_bounds = array<i64: 16, 128>}]} {
    %c0 = arith.constant 0 : index
    %c0_0 = arith.constant 0 : index
    %0 = vector.load %arg1[%c0, %c0_0] : memref<16x128xf32, #tpu.memory_space<vmem>>, vector<16x128xf32>
    %1 = arith.truncf %0 : vector<16x128xf32> to vector<16x128xbf16>
    %c0_1 = arith.constant 0 : index
    %c0_2 = arith.constant 0 : index
    %c0_3 = arith.constant 0 : index
    %2 = vector.load %arg2[%c0_1, %c0_2, %c0_3] : memref<3x128x128xbf16, #tpu.memory_space<vmem>>, vector<1x128x128xbf16>
    %3 = vector.shape_cast %2 : vector<1x128x128xbf16> to vector<128x128xbf16>
    %cst = arith.constant dense<0.000000e+00> : vector<16x128xf32>
    %4 = tpu.matmul %1, %3, %cst {dimension_numbers = #tpu.dot_dimension_numbers<[1], [0], [0], [1], [0, 0, 1, 1], [], []>} : vector<16x128xbf16>, vector<128x128xbf16>, vector<16x128xf32> -> vector<16x128xf32>
    %c0_4 = arith.constant 0 : index
    %c0_5 = arith.constant 0 : index
    %c0_6 = arith.constant 0 : index
    %5 = vector.load %arg3[%c0_4, %c0_5, %c0_6] : memref<3x1x128xf32, #tpu.memory_space<vmem>>, vector<1x1x128xf32>
    %6 = vector.shape_cast %5 : vector<1x1x128xf32> to vector<1x128xf32>
    %7 = vector.broadcast %6 : vector<1x128xf32> to vector<16x128xf32>
    %8 = arith.addf %4, %7 : vector<16x128xf32>
    %cst_7 = arith.constant 0.000000e+00 : f32
    %9 = vector.broadcast %cst_7 : f32 to vector<16x128xf32>
    %10 = arith.maximumf %8, %9 : vector<16x128xf32>
    %11 = arith.truncf %10 : vector<16x128xf32> to vector<16x128xbf16>
    %c0_8 = arith.constant 0 : index
    %c0_9 = arith.constant 0 : index
    %c0_10 = arith.constant 0 : index
    %12 = vector.load %arg4[%c0_8, %c0_9, %c0_10] : memref<3x128x128xbf16, #tpu.memory_space<vmem>>, vector<1x128x128xbf16>
    %13 = vector.shape_cast %12 : vector<1x128x128xbf16> to vector<128x128xbf16>
    %cst_11 = arith.constant dense<0.000000e+00> : vector<16x128xf32>
    %14 = tpu.matmul %11, %13, %cst_11 {dimension_numbers = #tpu.dot_dimension_numbers<[1], [0], [0], [1], [0, 0, 1, 1], [], []>} : vector<16x128xbf16>, vector<128x128xbf16>, vector<16x128xf32> -> vector<16x128xf32>
    %c0_12 = arith.constant 0 : index
    %c0_13 = arith.constant 0 : index
    %c0_14 = arith.constant 0 : index
    %15 = vector.load %arg5[%c0_12, %c0_13, %c0_14] : memref<3x1x128xf32, #tpu.memory_space<vmem>>, vector<1x1x128xf32>
    %16 = vector.shape_cast %15 : vector<1x1x128xf32> to vector<1x128xf32>
    %17 = vector.broadcast %16 : vector<1x128xf32> to vector<16x128xf32>
    %18 = arith.addf %14, %17 : vector<16x128xf32>
    %19 = arith.addf %0, %18 : vector<16x128xf32>
    %20 = arith.truncf %19 : vector<16x128xf32> to vector<16x128xbf16>
    %c1 = arith.constant 1 : index
    %c0_15 = arith.constant 0 : index
    %c0_16 = arith.constant 0 : index
    %21 = vector.load %arg2[%c1, %c0_15, %c0_16] : memref<3x128x128xbf16, #tpu.memory_space<vmem>>, vector<1x128x128xbf16>
    %22 = vector.shape_cast %21 : vector<1x128x128xbf16> to vector<128x128xbf16>
    %cst_17 = arith.constant dense<0.000000e+00> : vector<16x128xf32>
    %23 = tpu.matmul %20, %22, %cst_17 {dimension_numbers = #tpu.dot_dimension_numbers<[1], [0], [0], [1], [0, 0, 1, 1], [], []>} : vector<16x128xbf16>, vector<128x128xbf16>, vector<16x128xf32> -> vector<16x128xf32>
    %c1_18 = arith.constant 1 : index
    %c0_19 = arith.constant 0 : index
    %c0_20 = arith.constant 0 : index
    %24 = vector.load %arg3[%c1_18, %c0_19, %c0_20] : memref<3x1x128xf32, #tpu.memory_space<vmem>>, vector<1x1x128xf32>
    %25 = vector.shape_cast %24 : vector<1x1x128xf32> to vector<1x128xf32>
    %26 = vector.broadcast %25 : vector<1x128xf32> to vector<16x128xf32>
    %27 = arith.addf %23, %26 : vector<16x128xf32>
    %cst_21 = arith.constant 0.000000e+00 : f32
    %28 = vector.broadcast %cst_21 : f32 to vector<16x128xf32>
    %29 = arith.maximumf %27, %28 : vector<16x128xf32>
    %30 = arith.truncf %29 : vector<16x128xf32> to vector<16x128xbf16>
    %c1_22 = arith.constant 1 : index
    %c0_23 = arith.constant 0 : index
    %c0_24 = arith.constant 0 : index
    %31 = vector.load %arg4[%c1_22, %c0_23, %c0_24] : memref<3x128x128xbf16, #tpu.memory_space<vmem>>, vector<1x128x128xbf16>
    %32 = vector.shape_cast %31 : vector<1x128x128xbf16> to vector<128x128xbf16>
    %cst_25 = arith.constant dense<0.000000e+00> : vector<16x128xf32>
    %33 = tpu.matmul %30, %32, %cst_25 {dimension_numbers = #tpu.dot_dimension_numbers<[1], [0], [0], [1], [0, 0, 1, 1], [], []>} : vector<16x128xbf16>, vector<128x128xbf16>, vector<16x128xf32> -> vector<16x128xf32>
    %c1_26 = arith.constant 1 : index
    %c0_27 = arith.constant 0 : index
    %c0_28 = arith.constant 0 : index
    %34 = vector.load %arg5[%c1_26, %c0_27, %c0_28] : memref<3x1x128xf32, #tpu.memory_space<vmem>>, vector<1x1x128xf32>
    %35 = vector.shape_cast %34 : vector<1x1x128xf32> to vector<1x128xf32>
    %36 = vector.broadcast %35 : vector<1x128xf32> to vector<16x128xf32>
    %37 = arith.addf %33, %36 : vector<16x128xf32>
    %38 = arith.addf %19, %37 : vector<16x128xf32>
    %39 = arith.truncf %38 : vector<16x128xf32> to vector<16x128xbf16>
    %c2 = arith.constant 2 : index
    %c0_29 = arith.constant 0 : index
    %c0_30 = arith.constant 0 : index
    %40 = vector.load %arg2[%c2, %c0_29, %c0_30] : memref<3x128x128xbf16, #tpu.memory_space<vmem>>, vector<1x128x128xbf16>
    %41 = vector.shape_cast %40 : vector<1x128x128xbf16> to vector<128x128xbf16>
    %cst_31 = arith.constant dense<0.000000e+00> : vector<16x128xf32>
    %42 = tpu.matmul %39, %41, %cst_31 {dimension_numbers = #tpu.dot_dimension_numbers<[1], [0], [0], [1], [0, 0, 1, 1], [], []>} : vector<16x128xbf16>, vector<128x128xbf16>, vector<16x128xf32> -> vector<16x128xf32>
    %c2_32 = arith.constant 2 : index
    %c0_33 = arith.constant 0 : index
    %c0_34 = arith.constant 0 : index
    %43 = vector.load %arg3[%c2_32, %c0_33, %c0_34] : memref<3x1x128xf32, #tpu.memory_space<vmem>>, vector<1x1x128xf32>
    %44 = vector.shape_cast %43 : vector<1x1x128xf32> to vector<1x128xf32>
    %45 = vector.broadcast %44 : vector<1x128xf32> to vector<16x128xf32>
    %46 = arith.addf %42, %45 : vector<16x128xf32>
    %cst_35 = arith.constant 0.000000e+00 : f32
    %47 = vector.broadcast %cst_35 : f32 to vector<16x128xf32>
    %48 = arith.maximumf %46, %47 : vector<16x128xf32>
    %49 = arith.truncf %48 : vector<16x128xf32> to vector<16x128xbf16>
    %c2_36 = arith.constant 2 : index
    %c0_37 = arith.constant 0 : index
    %c0_38 = arith.constant 0 : index
    %50 = vector.load %arg4[%c2_36, %c0_37, %c0_38] : memref<3x128x128xbf16, #tpu.memory_space<vmem>>, vector<1x128x128xbf16>
    %51 = vector.shape_cast %50 : vector<1x128x128xbf16> to vector<128x128xbf16>
    %cst_39 = arith.constant dense<0.000000e+00> : vector<16x128xf32>
    %52 = tpu.matmul %49, %51, %cst_39 {dimension_numbers = #tpu.dot_dimension_numbers<[1], [0], [0], [1], [0, 0, 1, 1], [], []>} : vector<16x128xbf16>, vector<128x128xbf16>, vector<16x128xf32> -> vector<16x128xf32>
    %c2_40 = arith.constant 2 : index
    %c0_41 = arith.constant 0 : index
    %c0_42 = arith.constant 0 : index
    %53 = vector.load %arg5[%c2_40, %c0_41, %c0_42] : memref<3x1x128xf32, #tpu.memory_space<vmem>>, vector<1x1x128xf32>
    %54 = vector.shape_cast %53 : vector<1x1x128xf32> to vector<1x128xf32>
    %55 = vector.broadcast %54 : vector<1x128xf32> to vector<16x128xf32>
    %56 = arith.addf %52, %55 : vector<16x128xf32>
    %57 = arith.addf %38, %56 : vector<16x128xf32>
    %c0_43 = arith.constant 0 : index
    %c0_44 = arith.constant 0 : index
    %58 = vector.load %arg6[%c0_43, %c0_44] : memref<16x128xf32, #tpu.memory_space<vmem>>, vector<16x128xf32>
    tpu.vector_store %arg6[%c0_43, %c0_44], %57 {strides = array<i32>} : memref<16x128xf32, #tpu.memory_space<vmem>>, vector<16x128xf32>,
    return
  }
  func.func @transform_0(%arg0: i32) -> (i32, i32) {
    %c0_i32 = arith.constant 0 : i32
    %c0_i32_0 = arith.constant 0 : i32
    return %arg0, %c0_i32 : i32, i32
  }
  func.func @transform_1(%arg0: i32) -> (i32, i32, i32) {
    %c0_i32 = arith.constant 0 : i32
    %c0_i32_0 = arith.constant 0 : i32
    %c0_i32_1 = arith.constant 0 : i32
    %c0_i32_2 = arith.constant 0 : i32
    return %c0_i32, %c0_i32_0, %c0_i32_1 : i32, i32, i32
  }
  func.func @transform_2(%arg0: i32) -> (i32, i32, i32) {
    %c0_i32 = arith.constant 0 : i32
    %c0_i32_0 = arith.constant 0 : i32
    %c0_i32_1 = arith.constant 0 : i32
    %c0_i32_2 = arith.constant 0 : i32
    return %c0_i32, %c0_i32_0, %c0_i32_1 : i32, i32, i32
  }
  func.func @transform_3(%arg0: i32) -> (i32, i32, i32) {
    %c0_i32 = arith.constant 0 : i32
    %c0_i32_0 = arith.constant 0 : i32
    %c0_i32_1 = arith.constant 0 : i32
    %c0_i32_2 = arith.constant 0 : i32
    return %c0_i32, %c0_i32_0, %c0_i32_1 : i32, i32, i32
  }
  func.func @transform_4(%arg0: i32) -> (i32, i32, i32) {
    %c0_i32 = arith.constant 0 : i32
    %c0_i32_0 = arith.constant 0 : i32
    %c0_i32_1 = arith.constant 0 : i32
    %c0_i32_2 = arith.constant 0 : i32
    return %c0_i32, %c0_i32_0, %c0_i32_1 : i32, i32, i32
  }
  func.func @transform_5(%arg0: i32) -> (i32, i32) {
    %c0_i32 = arith.constant 0 : i32
    %c0_i32_0 = arith.constant 0 : i32
    return %arg0, %c0_i32 : i32, i32
  }
}

</mosaic_0001>

<bundles_post_ra>
// kernel: tpu_custom_call.1
= control target key start
LH: loop header
LB: loop body
LE: loop exit
PB: predicated region body
PF: predicated region fallthrough
CT: control target
= control target key end

     0   :  { %10 = vsyncpa [#allocation3], 0  ;;  %s1361_s0 = inlined_call_operand.hbm [shape: f32[16,128], index: 0, kind: input, shape index: {}, may-alias: {0,5}]   ;;  %s1362_s1 = inlined_call_operand.hbm [shape: bf16[3,128,128], index: 1, kind: input, shape index: {}]   ;;  %s1363_s2 = inlined_call_operand.vmem [shape: f32[3,1,128], index: 2, kind: input, shape index: {}]   ;;  %s1364_s3 = inlined_call_operand.hbm [shape: bf16[3,128,128], index: 3, kind: input, shape index: {}]   ;;  %s1365_s4 = inlined_call_operand.vmem [shape: f32[3,1,128], index: 4, kind: input, shape index: {}]   ;;  %s1366_s5 = inlined_call_operand.hbm [shape: f32[16,128], index: 5, kind: output, shape index: {}, may-alias: {0,5}]  }
   0x1   :  { %11 = vsyncpa [#allocation6], 0 }
   0x2   :  { %12 = vsyncpa [#allocation4], 0  ;;  %s1167_s18 = smov [#allocation5]   ;;  %s1073_s22 = scalar_lea.hbm %s1362_s1, 3072 }
   0x3   :  { %s30_s19 = sshll.u32 %s1167_s18, 4  ;;  %p1074_p0 = scmp.ne.s32.totalorder %s1362_s1, %s1073_s22  ;;  %s31_s19 = int_to_ptr.vmem [resolvable:$true] %s30_s19 }
   0x4   :  { %p1077_p1 = scmp.lt.u32.totalorder %s1073_s22, %s1362_s1 }
   0x6   :  { %p1079_p2 = pnand %p1077_p1, %p1074_p0 }
   0x8   :  { %1082 = shalt.err (!%p1079_p2)
}
   0x9   :  { %s1083_s27 = scalar_lea.vmem %s31_s19, 3072  ;;  %p1088_p4 = scmp.lt.s32.totalorder %s31_s19, %s31_s19 }
   0xa   :  { %p1084_p3 = scmp.ne.s32.totalorder %s31_s19, %s1083_s27  ;;  %p1089_p5 = scmp.lt.s32.totalorder %s1083_s27, %s1083_s27 }
   0xc   :  { %p1090_p6 = por %p1089_p5, %p1088_p4 }
   0xe   :  { %p1091_p7 = pnand %p1090_p6, %p1084_p3 }
  0x10   :  { %1094 = shalt.err (!%p1091_p7)
}
  0x11   :  { %s1168_s28 = smov 64   ;;  %s1169_s29 = smov 4  }
  0x12   :  { %36 = dma.hbm_to_vmem [thread:$0]  %s1362_s1, 3072, %s31_s19, [#allocation6], %s1168_s28, %s1168_s28, %s1169_s29  }
  0x13   :  { %s1170_s7 = smov [#allocation2]   ;;  %s1095_s11 = scalar_lea.hbm %s1361_s0, 256 }
  0x14   :  { %s18_s8 = sshll.u32 %s1170_s7, 4  ;;  %p1096_p8 = scmp.ne.s32.totalorder %s1361_s0, %s1095_s11  ;;  %s19_s8 = int_to_ptr.vmem [resolvable:$true] %s18_s8 }
  0x15   :  { %p1099_p9 = scmp.lt.u32.totalorder %s1095_s11, %s1361_s0 }
  0x17   :  { %p1101_p10 = pnand %p1099_p9, %p1096_p8 }
  0x19   :  { %1104 = shalt.err (!%p1101_p10)
}
  0x1a   :  { %s1105_s16 = scalar_lea.vmem %s19_s8, 256  ;;  %p1110_p12 = scmp.lt.s32.totalorder %s19_s8, %s19_s8 }
  0x1b   :  { %p1106_p11 = scmp.ne.s32.totalorder %s19_s8, %s1105_s16  ;;  %p1111_p13 = scmp.lt.s32.totalorder %s1105_s16, %s1105_s16 }
  0x1d   :  { %p1112_p0 = por %p1111_p13, %p1110_p12 }
  0x1f   :  { %p1113_p1 = pnand %p1112_p0, %p1106_p11 }
  0x21   :  { %1116 = shalt.err (!%p1113_p1)
}
  0x22   :  { %s1171_s1 = smov 128   ;;  %s1172_s17 = smov 8  }
  0x23   :  { %24 = dma.hbm_to_vmem [thread:$0]  %s1361_s0, 256, %s19_s8, [#allocation3], %s1171_s1, %s1171_s1, %s1172_s17  }
  0x24   :  { %s1173_s20 = smov [#allocation7]   ;;  %s1117_s24 = scalar_lea.hbm %s1364_s3, 3072 }
  0x25   :  { %s44_s21 = sshll.u32 %s1173_s20, 4  ;;  %p1118_p2 = scmp.ne.s32.totalorder %s1364_s3, %s1117_s24  ;;  %s45_s21 = int_to_ptr.vmem [resolvable:$true] %s44_s21 }
  0x26   :  { %p1121_p3 = scmp.lt.u32.totalorder %s1117_s24, %s1364_s3 }
  0x28   :  { %p1123_p4 = pnand %p1121_p3, %p1118_p2 }
  0x2a   :  { %1126 = shalt.err (!%p1123_p4)
}
  0x2b   :  { %s1127_s6 = scalar_lea.vmem %s45_s21, 3072  ;;  %p1132_p6 = scmp.lt.s32.totalorder %s45_s21, %s45_s21 }
  0x2c   :  { %p1128_p5 = scmp.ne.s32.totalorder %s45_s21, %s1127_s6  ;;  %p1133_p7 = scmp.lt.s32.totalorder %s1127_s6, %s1127_s6 }
  0x2e   :  { %p1134_p8 = por %p1133_p7, %p1132_p6 }
  0x30   :  { %p1135_p9 = pnand %p1134_p8, %p1128_p5 }
  0x32   :  { %1138 = shalt.err (!%p1135_p9)
}
  0x33   :  { %50 = dma.hbm_to_vmem [thread:$0]  %s1364_s3, 3072, %s45_s21, [#allocation6], %s1168_s28, %s1168_s28, %s1169_s29  }
  0x34   :  { %1161 = dma.done.wait [#allocation3], 256  }
  0x35   :  { %1162 = vsyncadd [#allocation3], 4294967040 }
  0x36   :  { %1163 = dma.done.wait [#allocation6], 6144  }
  0x37   :  { %1164 = vsyncadd [#allocation6], 4294961152  ;;  %v1174_v0 = vmov 0.0   ;;  %vm1175_vm0 = vmmov 0   ;;  %v1025_v1 = vld [vmem:[#allocation5] sm:$0xff]   ;;  %v1026_v2 = vld [vmem:[#allocation5 + $0x8] sm:$0xff]  }
  0x38   :  { %895 = vmatprep.subr.bf16.mxu0 %v1174_v0  ;;  %911 = vmatprep.mubr.msk.bf16.mxu0 %vm1175_vm0, %v1174_v0  ;;  %v1027_v3 = vld [vmem:[#allocation5 + $0x10] sm:$0xff]   ;;  %v1033_v4 = vld [vmem:[#allocation7] sm:$0xff]   ;;  %v1028_v5 = vld [vmem:[#allocation5 + $0x18] sm:$0xff]   ;;  %s1176_s18 = smov [#allocation8]  }
  0x39   :  { %915 = vmatprep.subr.bf16.mxu1 %v1174_v0  ;;  %931 = vmatprep.mubr.msk.bf16.mxu1 %vm1175_vm0, %v1174_v0  ;;  %v1034_v6 = vld [vmem:[#allocation7 + $0x8] sm:$0xff]   ;;  %v1029_v7 = vld [vmem:[#allocation5 + $0x20] sm:$0xff]   ;;  %v1035_v8 = vld [vmem:[#allocation7 + $0x10] sm:$0xff]  }
  0x3a   :  { %896 = vmatpush3.bf16.msra.mxu0 %v1025_v1  ;;  %916 = vmatpush3.bf16.msra.mxu1 %v1033_v4  ;;  %v1030_v9 = vld [vmem:[#allocation5 + $0x28] sm:$0xff]   ;;  %v1036_v10 = vld [vmem:[#allocation7 + $0x18] sm:$0xff]   ;;  %v1031_v11 = vld [vmem:[#allocation5 + $0x30] sm:$0xff]  }
  0x3b   :  { %897 = vmatprep.subr.bf16.mxu0 %v1174_v0  ;;  %917 = vmatprep.subr.bf16.mxu1 %v1174_v0  ;;  %v1037_v12 = vld [vmem:[#allocation7 + $0x20] sm:$0xff]   ;;  %v1032_v13 = vld [vmem:[#allocation5 + $0x38] sm:$0xff]   ;;  %v1267_v14 = vld [vmem:[#allocation2] sm:$0xff] }
  0x3c   :  { %v1269_v15 = vld [vmem:[#allocation2 + $0x8] sm:$0xff]  ;;  %v1038_v16 = vld [vmem:[#allocation7 + $0x28] sm:$0xff]   ;;  %v1039_v18 = vld [vmem:[#allocation7 + $0x30] sm:$0xff]  }
  0x3d   :  { %v65_v17 = vpack.c.bf16 %v1269_v15, %v1267_v14  ;;  %v1040_v19 = vld [vmem:[#allocation7 + $0x38] sm:$0xff]   ;;  %v1041_v20 = vld [vmem:[#allocation5 + $0x40] sm:$0xff]   ;;  %v1042_v21 = vld [vmem:[#allocation5 + $0x48] sm:$0xff]  }
  0x3e   :  { %898 = vmatpush3.bf16.msra.mxu0 %v1026_v2  ;;  %918 = vmatpush3.bf16.msra.mxu1 %v1034_v6  ;;  %v1043_v22 = vld [vmem:[#allocation5 + $0x50] sm:$0xff]   ;;  %v1044_v23 = vld [vmem:[#allocation5 + $0x58] sm:$0xff]   ;;  %v1045_v24 = vld [vmem:[#allocation5 + $0x60] sm:$0xff]  }
  0x3f   :  { %899 = vmatprep.subr.bf16.mxu0 %v1174_v0  ;;  %919 = vmatprep.subr.bf16.mxu1 %v1174_v0  ;;  %v1046_v25 = vld [vmem:[#allocation5 + $0x68] sm:$0xff]   ;;  %v783_v26 = vld [vmem:[%s1363_s2] ss:$0 sm:$0xff]  ;;  %v1048_v37 = vld [vmem:[#allocation5 + $0x78] sm:$0xff]  }
  0x40   :  { %v1047_v36 = vld [vmem:[#allocation5 + $0x70] sm:$0xff]   ;;  %v1049_v38 = vld [vmem:[#allocation7 + $0x40] sm:$0xff]   ;;  %v1050_v39 = vld [vmem:[#allocation7 + $0x48] sm:$0xff]  }
  0x41   :  { %v1051_v40 = vld [vmem:[#allocation7 + $0x50] sm:$0xff]   ;;  %v1052_v41 = vld [vmem:[#allocation7 + $0x58] sm:$0xff]   ;;  %v1053_v42 = vld [vmem:[#allocation7 + $0x60] sm:$0xff]  }
  0x42   :  { %900 = vmatpush3.bf16.msra.mxu0 %v1027_v3  ;;  %920 = vmatpush3.bf16.msra.mxu1 %v1035_v8  ;;  %v1054_v43 = vld [vmem:[#allocation7 + $0x68] sm:$0xff]   ;;  %v792_v44 = vld [vmem:[%s1365_s4] ss:$0 sm:$0xff]  ;;  %v1056_v55 = vld [vmem:[#allocation7 + $0x78] sm:$0xff]  }
  0x43   :  { %901 = vmatprep.subr.bf16.mxu0 %v1174_v0  ;;  %921 = vmatprep.subr.bf16.mxu1 %v1174_v0  ;;  %v1055_v54 = vld [vmem:[#allocation7 + $0x70] sm:$0xff]   ;;  %v1057_v56 = vld [vmem:[#allocation5 + $0x80] sm:$0xff]   ;;  %v1058_v57 = vld [vmem:[#allocation5 + $0x88] sm:$0xff]  }
  0x44   :  { %v1059_v58 = vld [vmem:[#allocation5 + $0x90] sm:$0xff]   ;;  %v1060_v59 = vld [vmem:[#allocation5 + $0x98] sm:$0xff]   ;;  %v1061_v60 = vld [vmem:[#allocation5 + $0xa0] sm:$0xff]  }
  0x45   :  { %v1062_v61 = vld [vmem:[#allocation5 + $0xa8] sm:$0xff]   ;;  %v802_v62 = vld [vmem:[%s1363_s2 + $0x1] ss:$0 sm:$0xff] }
  0x46   :  { %902 = vmatpush3.bf16.msra.mxu0 %v1028_v5  ;;  %922 = vmatpush3.bf16.msra.mxu1 %v1036_v10  ;;  %v1064_v10 = vld [vmem:[#allocation5 + $0xb8] sm:$0xff]  }
  0x47   :  { %903 = vmatprep.subr.bf16.mxu0 %v1174_v0  ;;  %923 = vmatprep.subr.bf16.mxu1 %v1174_v0 }
  0x4a   :  { %904 = vmatpush3.bf16.msra.mxu0 %v1029_v7  ;;  %924 = vmatpush3.bf16.msra.mxu1 %v1037_v12  ;;  %v1066_v12 = vld [vmem:[#allocation7 + $0x88] sm:$0xff]  }
  0x4b   :  { %905 = vmatprep.subr.bf16.mxu0 %v1174_v0  ;;  %925 = vmatprep.subr.bf16.mxu1 %v1174_v0 }
  0x4e   :  { %906 = vmatpush3.bf16.msra.mxu0 %v1030_v9  ;;  %926 = vmatpush3.bf16.msra.mxu1 %v1038_v16  ;;  %v1063_v9 = vld [vmem:[#allocation5 + $0xb0] sm:$0xff]   ;;  %v1070_v16 = vld [vmem:[#allocation7 + $0xa8] sm:$0xff]  }
  0x4f   :  { %907 = vmatprep.subr.bf16.mxu0 %v1174_v0  ;;  %927 = vmatprep.subr.bf16.mxu1 %v1174_v0 }
  0x52   :  { %908 = vmatpush3.bf16.msra.mxu0 %v1031_v11  ;;  %928 = vmatpush3.bf16.msra.mxu1 %v1039_v18  ;;  %v1065_v11 = vld [vmem:[#allocation7 + $0x80] sm:$0xff]  }
  0x53   :  { %909 = vmatprep.subr.bf16.mxu0 %v1174_v0  ;;  %929 = vmatprep.subr.bf16.mxu1 %v1174_v0 }
  0x56   :  { %910 = vmatpush3.bf16.msra.mxu0 %v1032_v13  ;;  %930 = vmatpush3.bf16.msra.mxu1 %v1040_v19  ;;  %v1067_v13 = vld [vmem:[#allocation7 + $0x90] sm:$0xff]  }
  0x57   :  { %935 = vmatprep.subr.bf16.mxu0 %v1174_v0  ;;  %955 = vmatprep.subr.bf16.mxu1 %v1174_v0 }
  0x59   :  { %912 = vmatmul.mubr.bf16.vlgmr.msra.gmra.mrb[0].mxu0 %v65_v17  ;;  %v812_v17 = vld [vmem:[%s1365_s4 + $0x1] ss:$0 sm:$0xff] }
  0x5a   :  { %951 = vmatprep.mubr.msk.bf16.mxu0 %vm1175_vm0, %v1174_v0  ;;  %936 = vmatpush3.bf16.msra.mxu0 %v1041_v20 }
  0x5b   :  { %937 = vmatprep.subr.bf16.mxu0 %v1174_v0 }
  0x5e   :  { %938 = vmatpush3.bf16.msra.mxu0 %v1042_v21 }
  0x5f   :  { %939 = vmatprep.subr.bf16.mxu0 %v1174_v0 }
  0x62   :  { %940 = vmatpush3.bf16.msra.mxu0 %v1043_v22 }
  0x63   :  { %941 = vmatprep.subr.bf16.mxu0 %v1174_v0 }
  0x66   :  { %942 = vmatpush3.bf16.msra.mxu0 %v1044_v23 }
  0x67   :  { %943 = vmatprep.subr.bf16.mxu0 %v1174_v0 }
  0x6a   :  { %944 = vmatpush3.bf16.msra.mxu0 %v1045_v24 }
  0x6b   :  { %945 = vmatprep.subr.bf16.mxu0 %v1174_v0 }
  0x6e   :  { %946 = vmatpush3.bf16.msra.mxu0 %v1046_v25 }
  0x6f   :  { %947 = vmatprep.subr.bf16.mxu0 %v1174_v0 }
  0x72   :  { %948 = vmatpush3.bf16.msra.mxu0 %v1047_v36 }
  0x73   :  { %949 = vmatprep.subr.bf16.mxu0 %v1174_v0 }
  0x76   :  { %950 = vmatpush3.bf16.msra.mxu0 %v1048_v37 }
  0x77   :  { %975 = vmatprep.subr.bf16.mxu0 %v1174_v0 }
 0x12c   :  { %v171_v27 = vpop.f32.mrb[0].mxu0 }
 0x12d   :  { %v172_v28 = vadd.f32 %v783_v26, %v171_v27  ;;  %v913_v29 = vpop.f32.mrb[1].mxu0  ;;  %v1071_v27 = vld [vmem:[#allocation7 + $0xb0] sm:$0xff]  }
 0x12e   :  { %v174_v30 = vpop.f32.mrb[2].mxu0  ;;  %v822_v29 = vld [vmem:[%s1363_s2 + $0x2] ss:$0 sm:$0xff]  ;;  %s770_s2 = sshll.u32 %s1176_s18, 4  ;;  %s771_s2 = int_to_ptr.vmem [resolvable:$true] %s770_s2 }
 0x12f   :  { %v175_v31 = vadd.f32 %v783_v26, %v174_v30  ;;  %v914_v32 = vpop.f32.mrb[3].mxu0  ;;  %v178_v33 = vmax.f32 %v172_v28, 0.0  ;;  %v1072_v28 = vld [vmem:[#allocation7 + $0xb8] sm:$0xff]   ;;  %s1139_s19 = scalar_lea.vmem %s771_s2, 256  ;;  %p1144_p11 = scmp.lt.s32.totalorder %s771_s2, %s771_s2 }
 0x130   :  { %p1140_p10 = scmp.ne.s32.totalorder %s771_s2, %s1139_s19  ;;  %p1145_p12 = scmp.lt.s32.totalorder %s1139_s19, %s1139_s19 }
 0x131   :  { %v179_v34 = vmax.f32 %v175_v31, 0.0 }
 0x132   :  { %p1146_p13 = por %p1145_p12, %p1144_p11 }
 0x133   :  { %v180_v35 = vpack.c.bf16 %v179_v34, %v178_v33 }
 0x134   :  { %p1147_p0 = pnand %p1146_p13, %p1140_p10 }
 0x135   :  { %932 = vmatmul.mubr.bf16.vlgmr.msra.gmra.mrb[0].mxu1 %v180_v35 }
 0x136   :  { %971 = vmatprep.mubr.msk.bf16.mxu1 %vm1175_vm0, %v1174_v0  ;;  %956 = vmatpush3.bf16.msra.mxu1 %v1049_v38 }
 0x137   :  { %957 = vmatprep.subr.bf16.mxu1 %v1174_v0 }
 0x13a   :  { %958 = vmatpush3.bf16.msra.mxu1 %v1050_v39 }
 0x13b   :  { %959 = vmatprep.subr.bf16.mxu1 %v1174_v0 }
 0x13e   :  { %960 = vmatpush3.bf16.msra.mxu1 %v1051_v40 }
 0x13f   :  { %961 = vmatprep.subr.bf16.mxu1 %v1174_v0 }
 0x142   :  { %962 = vmatpush3.bf16.msra.mxu1 %v1052_v41 }
 0x143   :  { %963 = vmatprep.subr.bf16.mxu1 %v1174_v0 }
 0x146   :  { %964 = vmatpush3.bf16.msra.mxu1 %v1053_v42 }
 0x147   :  { %965 = vmatprep.subr.bf16.mxu1 %v1174_v0 }
 0x14a   :  { %966 = vmatpush3.bf16.msra.mxu1 %v1054_v43 }
 0x14b   :  { %967 = vmatprep.subr.bf16.mxu1 %v1174_v0 }
 0x14e   :  { %968 = vmatpush3.bf16.msra.mxu1 %v1055_v54 }
 0x14f   :  { %969 = vmatprep.subr.bf16.mxu1 %v1174_v0 }
 0x152   :  { %970 = vmatpush3.bf16.msra.mxu1 %v1056_v55 }
 0x153   :  { %995 = vmatprep.subr.bf16.mxu1 %v1174_v0 }
 0x208   :  { %v286_v45 = vpop.f32.mrb[0].mxu1 }
 0x209   :  { %v287_v46 = vadd.f32 %v792_v44, %v286_v45  ;;  %v933_v47 = vpop.f32.mrb[1].mxu1 }
 0x20a   :  { %v289_v48 = vpop.f32.mrb[2].mxu1 }
 0x20b   :  { %v290_v49 = vadd.f32 %v792_v44, %v289_v48  ;;  %v934_v50 = vpop.f32.mrb[3].mxu1  ;;  %v1305_v51 = vadd.f32 %v287_v46, %v1267_v14  ;;  %v1068_v14 = vld [vmem:[#allocation7 + $0x98] sm:$0xff]  }
 0x20d   :  { %v1308_v52 = vadd.f32 %v290_v49, %v1269_v15  ;;  %v1069_v15 = vld [vmem:[#allocation7 + $0xa0] sm:$0xff]  }
 0x20f   :  { %v295_v53 = vpack.c.bf16 %v1308_v52, %v1305_v51 }
 0x211   :  { %952 = vmatmul.mubr.bf16.vlgmr.msra.gmra.mrb[4].mxu0 %v295_v53 }
 0x212   :  { %991 = vmatprep.mubr.msk.bf16.mxu0 %vm1175_vm0, %v1174_v0  ;;  %976 = vmatpush3.bf16.msra.mxu0 %v1057_v56 }
 0x213   :  { %977 = vmatprep.subr.bf16.mxu0 %v1174_v0 }
 0x216   :  { %978 = vmatpush3.bf16.msra.mxu0 %v1058_v57 }
 0x217   :  { %979 = vmatprep.subr.bf16.mxu0 %v1174_v0 }
 0x21a   :  { %980 = vmatpush3.bf16.msra.mxu0 %v1059_v58 }
 0x21b   :  { %981 = vmatprep.subr.bf16.mxu0 %v1174_v0 }
 0x21e   :  { %982 = vmatpush3.bf16.msra.mxu0 %v1060_v59 }
 0x21f   :  { %983 = vmatprep.subr.bf16.mxu0 %v1174_v0 }
 0x222   :  { %984 = vmatpush3.bf16.msra.mxu0 %v1061_v60 }
 0x223   :  { %985 = vmatprep.subr.bf16.mxu0 %v1174_v0 }
 0x226   :  { %986 = vmatpush3.bf16.msra.mxu0 %v1062_v61 }
 0x227   :  { %987 = vmatprep.subr.bf16.mxu0 %v1174_v0 }
 0x22a   :  { %988 = vmatpush3.bf16.msra.mxu0 %v1063_v9 }
 0x22b   :  { %989 = vmatprep.subr.bf16.mxu0 %v1174_v0 }
 0x22e   :  { %990 = vmatpush3.bf16.msra.mxu0 %v1064_v10 }
 0x2e4   :  { %v403_v63 = vpop.f32.mrb[4].mxu0 }
 0x2e5   :  { %v404_v1 = vadd.f32 %v802_v62, %v403_v63  ;;  %v953_v2 = vpop.f32.mrb[5].mxu0 }
 0x2e6   :  { %v406_v3 = vpop.f32.mrb[6].mxu0 }
 0x2e7   :  { %v407_v4 = vadd.f32 %v802_v62, %v406_v3  ;;  %v954_v5 = vpop.f32.mrb[7].mxu0  ;;  %v410_v6 = vmax.f32 %v404_v1, 0.0 }
 0x2e9   :  { %v411_v7 = vmax.f32 %v407_v4, 0.0 }
 0x2eb   :  { %v412_v8 = vpack.c.bf16 %v411_v7, %v410_v6 }
 0x2ed   :  { %972 = vmatmul.mubr.bf16.vlgmr.msra.gmra.mrb[4].mxu1 %v412_v8 }
 0x2ee   :  { %1011 = vmatprep.mubr.msk.bf16.mxu1 %vm1175_vm0, %v1174_v0  ;;  %996 = vmatpush3.bf16.msra.mxu1 %v1065_v11 }
 0x2ef   :  { %997 = vmatprep.subr.bf16.mxu1 %v1174_v0 }
 0x2f2   :  { %998 = vmatpush3.bf16.msra.mxu1 %v1066_v12 }
 0x2f3   :  { %999 = vmatprep.subr.bf16.mxu1 %v1174_v0 }
 0x2f6   :  { %1000 = vmatpush3.bf16.msra.mxu1 %v1067_v13 }
 0x2f7   :  { %1001 = vmatprep.subr.bf16.mxu1 %v1174_v0 }
 0x2fa   :  { %1002 = vmatpush3.bf16.msra.mxu1 %v1068_v14 }
 0x2fb   :  { %1003 = vmatprep.subr.bf16.mxu1 %v1174_v0 }
 0x2fe   :  { %1004 = vmatpush3.bf16.msra.mxu1 %v1069_v15 }
 0x2ff   :  { %1005 = vmatprep.subr.bf16.mxu1 %v1174_v0 }
 0x302   :  { %1006 = vmatpush3.bf16.msra.mxu1 %v1070_v16 }
 0x303   :  { %1007 = vmatprep.subr.bf16.mxu1 %v1174_v0 }
 0x306   :  { %1008 = vmatpush3.bf16.msra.mxu1 %v1071_v27 }
 0x307   :  { %1009 = vmatprep.subr.bf16.mxu1 %v1174_v0  ;;  %v832_v0 = vld [vmem:[%s1365_s4 + $0x2] ss:$0 sm:$0xff] }
 0x30a   :  { %1010 = vmatpush3.bf16.msra.mxu1 %v1072_v28 }
 0x3c0   :  { %v520_v18 = vpop.f32.mrb[4].mxu1 }
 0x3c1   :  { %v521_v19 = vadd.f32 %v812_v17, %v520_v18  ;;  %v973_v20 = vpop.f32.mrb[5].mxu1 }
 0x3c2   :  { %v523_v21 = vpop.f32.mrb[6].mxu1 }
 0x3c3   :  { %v524_v22 = vadd.f32 %v812_v17, %v523_v21  ;;  %v974_v23 = vpop.f32.mrb[7].mxu1  ;;  %v527_v24 = vadd.f32 %v521_v19, %v1305_v51 }
 0x3c5   :  { %v528_v25 = vadd.f32 %v524_v22, %v1308_v52 }
 0x3c7   :  { %v529_v26 = vpack.c.bf16 %v528_v25, %v527_v24 }
 0x3c9   :  { %992 = vmatmul.mubr.bf16.vlgmr.msra.gmra.mrb[8].mxu0 %v529_v26 }
 0x49c   :  { %v637_v30 = vpop.f32.mrb[8].mxu0 }
 0x49d   :  { %v638_v31 = vadd.f32 %v822_v29, %v637_v30  ;;  %v993_v32 = vpop.f32.mrb[9].mxu0 }
 0x49e   :  { %v640_v33 = vpop.f32.mrb[10].mxu0 }
 0x49f   :  { %v641_v34 = vadd.f32 %v822_v29, %v640_v33  ;;  %v994_v35 = vpop.f32.mrb[11].mxu0  ;;  %v644_v36 = vmax.f32 %v638_v31, 0.0 }
 0x4a1   :  { %v645_v37 = vmax.f32 %v641_v34, 0.0 }
 0x4a3   :  { %v646_v38 = vpack.c.bf16 %v645_v37, %v644_v36 }
 0x4a5   :  { %1012 = vmatmul.mubr.bf16.vlgmr.msra.gmra.mrb[8].mxu1 %v646_v38 }
 0x578   :  { %v754_v39 = vpop.f32.mrb[8].mxu1 }
 0x579   :  { %v755_v40 = vadd.f32 %v832_v0, %v754_v39  ;;  %v1013_v41 = vpop.f32.mrb[9].mxu1 }
 0x57a   :  { %v757_v42 = vpop.f32.mrb[10].mxu1 }
 0x57b   :  { %v761_v43 = vadd.f32 %v755_v40, %v527_v24  ;;  %v758_v44 = vadd.f32 %v832_v0, %v757_v42  ;;  %v1014_v45 = vpop.f32.mrb[11].mxu1 }
 0x57d   :  { %763 = vst [vmem:[#allocation8] sm:$0xff] %v761_v43  ;;  %v762_v46 = vadd.f32 %v758_v44, %v528_v25 }
 0x57f   :  { %764 = vst [vmem:[#allocation8 + $0x8] sm:$0xff] %v762_v46 }
 0x580   :  { %1150 = shalt.err (!%p1147_p0)
}
 0x581   :  { %s1151_s21 = scalar_lea.hbm %s1366_s5, 256 }
 0x582   :  { %p1152_p1 = scmp.ne.s32.totalorder %s1366_s5, %s1151_s21  ;;  %p1155_p2 = scmp.lt.u32.totalorder %s1151_s21, %s1366_s5 }
 0x584   :  { %p1157_p3 = pnand %p1155_p2, %p1152_p1 }
 0x586   :  { %1160 = shalt.err (!%p1157_p3)
}
 0x587   :  { %776 = dma.vmem_to_hbm [thread:$0]  %s771_s2, 256, %s1366_s5, [#allocation4], %s1171_s1, %s1171_s1, %s1172_s17  }
 0x588   :  { %1165 = dma.done.wait [#allocation4], 256  }
 0x589   :  { %1166 = vsyncadd [#allocation4], 4294967040 }
 0x58a   :  { %780 = vsyncpa [#allocation3], 1 }
 0x58b   :  { %781 = vsyncpa [#allocation6], 1 }
 0x58c   :  { %782 = vsyncpa [#allocation4], 1 }

</bundles_post_ra>
